<compile_context>
chip_gen: v7x
topology: tpu7x:2x2x1
jax: 0.10.0
libtpu: 0.0.40
codegen_flags: <defaults>
</compile_context>

<pallas_src>
import jax
import jax.numpy as jnp
from jax.experimental import pallas as pl
from jax.experimental.pallas import tpu as pltpu


def se_kernel(x_ref, wfcT_ref, wgcnT_ref, o_ref):
    # x_ref block: (Bt, C, HW) -- native NCHW view, HW on lanes, C on sublanes.
    x = x_ref[...]

    # Global average pool over spatial positions (XLU lane reduce, f32 accum).
    pooled = jnp.mean(x, axis=-1, dtype=jnp.float32)                        # (Bt, C)

    # fc: Linear(C, C//r, bias=False) + ReLU.
    h = jnp.dot(pooled, wfcT_ref[...], preferred_element_type=jnp.float32)  # (Bt, hid)
    h = jnp.maximum(h, 0.0)

    # GCNConv on the single-node graph degenerates to a plain linear map.
    s = jnp.dot(h, wgcnT_ref[...], preferred_element_type=jnp.float32)      # (Bt, C)
    # NOTE: nn.Sigmoid() is defined in the module but never called in forward.

    # Channel-wise rescale: cast s once, multiply in the input dtype.
    o_ref[...] = x * s[:, :, None].astype(x.dtype)


def _hw_info():
    """(num_tensorcores_per_chip, physical_vmem_bytes) with safe fallbacks."""
    num_cores = 1
    vmem_bytes = 64 * 1024 * 1024  # conservative (v7x) default
    try:
        info = pltpu.get_tpu_info()
        vmem_bytes = int(getattr(info, "vmem_capacity_bytes", vmem_bytes))
        for attr in ("num_tensorcores", "tensorcore_count", "num_cores",
                     "cores_per_chip"):
            v = getattr(info, attr, None)
            if v:
                num_cores = int(v)
                break
    except Exception:
        pass
    if num_cores == 1:
        try:
            kind = jax.devices()[0].device_kind.lower()
            if "v7" in kind:
                num_cores = 2  # v7x: 2 TensorCores per chip
        except Exception:
            pass
    return num_cores, vmem_bytes


def _pick_batch_tile(b, per_sample_bytes, num_cores, vmem_limit_bytes, weight_bytes):
    """Balanced batch tiling: big blocks, >=2 steps/core on multi-TC chips."""
    # 2 input buffers + 2 output buffers per block must fit the scoped VMEM
    # limit; leave headroom for the (tiny) weights and compiler scratch.
    block_budget = max(per_sample_bytes,
                       (vmem_limit_bytes - weight_bytes - (2 << 20)) // 4)
    # ~8 MiB blocks amortize the ~0.35 us/step grid overhead on all gens.
    target = min(block_budget, 8 << 20)
    bt_max = int(max(1, min(b, target // max(per_sample_bytes, 1))))

    num_blocks = -(-b // bt_max)
    if num_cores > 1:
        # >= 2 grid steps per TensorCore so each core's double-buffer overlaps.
        num_blocks = max(num_blocks, min(b, 2 * num_cores))
    bt = -(-b // num_blocks)            # balanced split; ragged last block OK
    return bt, -(-b // bt)


def se_layer(x, wfc_t, wgcn_t, *, in_place=False):
    """x: (B, C, H, W) NCHW; wfc_t: (C, C//r) = W_fc^T; wgcn_t: (C//r, C) = W_gcn^T.

    Weights are taken pre-transposed (hoist the .T out of the per-call path).
    Returns (B, C, H, W).  If in_place=True the input buffer is donated/aliased.
    """
    b, c, h, w = x.shape
    hw = h * w
    hidden = wfc_t.shape[1]
    itemsize = x.dtype.itemsize

    # Zero-copy view of NCHW: no transpose, no extra HBM traffic.
    x_flat = x.reshape(b, c, hw)

    num_cores, vmem_bytes = _hw_info()
    # v7x (64 MiB) -> 48 MiB limit; v5e/v6e (128 MiB) -> 96 MiB limit.
    vmem_limit = int(min(96 * 1024 * 1024, (vmem_bytes * 3) // 4))

    weight_bytes = (c * hidden + hidden * c) * wfc_t.dtype.itemsize
    per_sample_bytes = c * hw * itemsize
    bt, num_blocks = _pick_batch_tile(b, per_sample_bytes, num_cores,
                                      vmem_limit, weight_bytes)

    cost = pl.CostEstimate(
        flops=int(2 * b * c * hw + 4 * b * c * hidden),
        transcendentals=0,
        bytes_accessed=int(2 * b * c * hw * itemsize + weight_bytes),
    )

    out = pl.pallas_call(
        se_kernel,
        out_shape=jax.ShapeDtypeStruct((b, c, hw), x.dtype),
        grid=(num_blocks,),
        in_specs=[
            pl.BlockSpec((bt, c, hw), lambda i: (i, 0, 0)),   # feature maps
            pl.BlockSpec((c, hidden), lambda i: (0, 0)),      # W_fc^T (whole)
            pl.BlockSpec((hidden, c), lambda i: (0, 0)),      # W_gcn^T (whole)
        ],
        out_specs=pl.BlockSpec((bt, c, hw), lambda i: (i, 0, 0)),
        compiler_params=pltpu.CompilerParams(
            dimension_semantics=("parallel",),
            vmem_limit_bytes=vmem_limit,
        ),
        cost_estimate=cost,
        input_output_aliases=({0: 0} if in_place else {}),
    )(x_flat, wfc_t, wgcn_t)

    return out.reshape(b, c, h, w)


def se_layer_ref(x, w_fc, w_gcn):
    """Pure-JAX reference of the same math, for a sanity check."""
    pooled = jnp.mean(x, axis=(2, 3))                    # (B, C)
    hid = jnp.maximum(pooled @ w_fc.T, 0.0)              # (B, C//r)
    s = hid @ w_gcn.T                                    # (B, C)
    return x * s[:, :, None, None]


if __name__ == "__main__":
    # Small shapes consistent with the module (channel >= reduction).
    B, C, H, W = 2, 128, 16, 16
    reduction = 16
    hidden = C // reduction                               # 8

    key = jax.random.PRNGKey(0)
    kx, k1, k2 = jax.random.split(key, 3)

    x = jax.random.normal(kx, (B, C, H, W), dtype=jnp.float32)
    # Deterministic synthetic parameters: nn.Linear(C, C//r, bias=False) and
    # GCNConv(C//r, C, bias=False) weights (module layout).
    w_fc = 0.1 * jax.random.normal(k1, (hidden, C), dtype=jnp.float32)
    w_gcn = 0.1 * jax.random.normal(k2, (C, hidden), dtype=jnp.float32)

    # Hoisted, one-time transposes (stored pre-transposed in a real model).
    wfc_t = jnp.asarray(w_fc.T)      # (C, hidden)
    wgcn_t = jnp.asarray(w_gcn.T)    # (hidden, C)

    out = se_layer(x, wfc_t, wgcn_t)
    out = jax.block_until_ready(out)

    ref = se_layer_ref(x, w_fc, w_gcn)
    assert out.shape == (B, C, H, W)
    assert jnp.allclose(out, ref, atol=1e-4, rtol=1e-4), "mismatch vs reference"

    print("KERNEL_OK")
</pallas_src>

<mosaic_0001>
module attributes {stable_mosaic.version = 11 : i64} {
  func.func @se_kernel(%arg0: i32, %arg1: memref<2x128x256xf32, #tpu.memory_space<vmem>>, %arg2: memref<128x8xf32, #tpu.memory_space<vmem>>, %arg3: memref<8x128xf32, #tpu.memory_space<vmem>>, %arg4: memref<2x128x256xf32, #tpu.memory_space<vmem>>) attributes {dimension_semantics = [#tpu.dimension_semantics<parallel>], iteration_bounds = array<i64: 1>, scalar_prefetch = 0 : i64, scratch_operands = 0 : i64, tpu.core_type = #tpu.core_type<tc>, window_params = [{transform_indices = @transform_0, window_bounds = array<i64: 2, 128, 256>}, {pipeline_mode = #tpu.pipeline_mode<synchronous>, transform_indices = @transform_1, window_bounds = array<i64: 128, 8>}, {pipeline_mode = #tpu.pipeline_mode<synchronous>, transform_indices = @transform_2, window_bounds = array<i64: 8, 128>}, {transform_indices = @transform_3, window_bounds = array<i64: 2, 128, 256>}]} {
    %c0 = arith.constant 0 : index
    %c0_0 = arith.constant 0 : index
    %c0_1 = arith.constant 0 : index
    %0 = vector.load %arg1[%c0, %c0_0, %c0_1] : memref<2x128x256xf32, #tpu.memory_space<vmem>>, vector<2x128x256xf32>
    %cst = arith.constant dense<0.000000e+00> : vector<2x128xf32>
    %1 = vector.multi_reduction <add>, %0, %cst [2] : vector<2x128x256xf32> to vector<2x128xf32>
    %cst_2 = arith.constant 2.560000e+02 : f32
    %2 = vector.broadcast %cst_2 : f32 to vector<2x128xf32>
    %3 = arith.divf %1, %2 : vector<2x128xf32>
    %c0_3 = arith.constant 0 : index
    %c0_4 = arith.constant 0 : index
    %4 = vector.load %arg2[%c0_3, %c0_4] : memref<128x8xf32, #tpu.memory_space<vmem>>, vector<128x8xf32>
    %cst_5 = arith.constant dense<0.000000e+00> : vector<2x8xf32>
    %5 = tpu.matmul %3, %4, %cst_5 {dimension_numbers = #tpu.dot_dimension_numbers<[1], [0], [0], [1], [0, 0, 1, 1], [], []>} : vector<2x128xf32>, vector<128x8xf32>, vector<2x8xf32> -> vector<2x8xf32>
    %cst_6 = arith.constant 0.000000e+00 : f32
    %6 = vector.broadcast %cst_6 : f32 to vector<2x8xf32>
    %7 = arith.maximumf %5, %6 : vector<2x8xf32>
    %c0_7 = arith.constant 0 : index
    %c0_8 = arith.constant 0 : index
    %8 = vector.load %arg3[%c0_7, %c0_8] : memref<8x128xf32, #tpu.memory_space<vmem>>, vector<8x128xf32>
    %cst_9 = arith.constant dense<0.000000e+00> : vector<2x128xf32>
    %9 = tpu.matmul %7, %8, %cst_9 {dimension_numbers = #tpu.dot_dimension_numbers<[1], [0], [0], [1], [0, 0, 1, 1], [], []>} : vector<2x8xf32>, vector<8x128xf32>, vector<2x128xf32> -> vector<2x128xf32>
    %10 = vector.shape_cast %9 : vector<2x128xf32> to vector<2x128x1xf32>
    %11 = vector.broadcast %10 : vector<2x128x1xf32> to vector<2x128x256xf32>
    %12 = arith.mulf %0, %11 : vector<2x128x256xf32>
    %c0_10 = arith.constant 0 : index
    %c0_11 = arith.constant 0 : index
    %c0_12 = arith.constant 0 : index
    %13 = vector.load %arg4[%c0_10, %c0_11, %c0_12] : memref<2x128x256xf32, #tpu.memory_space<vmem>>, vector<2x128x256xf32>
    tpu.vector_store %arg4[%c0_10, %c0_11, %c0_12], %12 {strides = array<i32>} : memref<2x128x256xf32, #tpu.memory_space<vmem>>, vector<2x128x256xf32>,
    return
  }
  func.func @transform_0(%arg0: i32) -> (i32, i32, i32) {
    %c0_i32 = arith.constant 0 : i32
    %c0_i32_0 = arith.constant 0 : i32
    %c0_i32_1 = arith.constant 0 : i32
    return %arg0, %c0_i32, %c0_i32_0 : i32, i32, i32
  }
  func.func @transform_1(%arg0: i32) -> (i32, i32) {
    %c0_i32 = arith.constant 0 : i32
    %c0_i32_0 = arith.constant 0 : i32
    %c0_i32_1 = arith.constant 0 : i32
    return %c0_i32, %c0_i32_0 : i32, i32
  }
  func.func @transform_2(%arg0: i32) -> (i32, i32) {
    %c0_i32 = arith.constant 0 : i32
    %c0_i32_0 = arith.constant 0 : i32
    %c0_i32_1 = arith.constant 0 : i32
    return %c0_i32, %c0_i32_0 : i32, i32
  }
  func.func @transform_3(%arg0: i32) -> (i32, i32, i32) {
    %c0_i32 = arith.constant 0 : i32
    %c0_i32_0 = arith.constant 0 : i32
    %c0_i32_1 = arith.constant 0 : i32
    return %arg0, %c0_i32, %c0_i32_0 : i32, i32, i32
  }
}

</mosaic_0001>

<bundles_post_ra>
// kernel: tpu_custom_call.1
= control target key start
LH: loop header
LB: loop body
LE: loop exit
PB: predicated region body
PF: predicated region fallthrough
CT: control target
= control target key end

     0   :  { %8 = vsyncpa [#allocation3], 0  ;;  %s1526_s0 = inlined_call_operand.hbm [shape: f32[2,128,256], index: 0, kind: input, shape index: {}]   ;;  %s1527_s1 = inlined_call_operand.vmem [shape: f32[128,8], index: 1, kind: input, shape index: {}]   ;;  %s1528_s2 = inlined_call_operand.vmem [shape: f32[8,128], index: 2, kind: input, shape index: {}]   ;;  %s1529_s3 = inlined_call_operand.hbm [shape: f32[2,128,256], index: 3, kind: output, shape index: {}]  }
   0x1   :  { %9 = vsyncpa [#allocation4], 0  ;;  %s1027_s12 = smov [#allocation2]   ;;  %s979_s16 = scalar_lea.hbm %s1526_s0, 8192 }
   0x2   :  { %s15_s13 = sshll.u32 %s1027_s12, 4  ;;  %p980_p0 = scmp.ne.s32.totalorder %s1526_s0, %s979_s16  ;;  %s16_s13 = int_to_ptr.vmem [resolvable:$true] %s15_s13 }
   0x3   :  { %p983_p1 = scmp.lt.u32.totalorder %s979_s16, %s1526_s0 }
   0x5   :  { %p985_p2 = pnand %p983_p1, %p980_p0 }
   0x7   :  { %988 = shalt.err (!%p985_p2)
}
   0x8   :  { %s989_s21 = scalar_lea.vmem %s16_s13, 8192  ;;  %p994_p4 = scmp.lt.s32.totalorder %s16_s13, %s16_s13 }
   0x9   :  { %p990_p3 = scmp.ne.s32.totalorder %s16_s13, %s989_s21  ;;  %p995_p5 = scmp.lt.s32.totalorder %s989_s21, %s989_s21 }
   0xb   :  { %p996_p6 = por %p995_p5, %p994_p4 }
   0xd   :  { %p997_p7 = pnand %p996_p6, %p990_p3 }
   0xf   :  { %1000 = shalt.err (!%p997_p7)
}
  0x10   :  { %s1028_s22 = smov 256   ;;  %s1029_s23 = smov 16  }
  0x11   :  { %21 = dma.hbm_to_vmem [thread:$0]  %s1526_s0, 8192, %s16_s13, [#allocation3], %s1028_s22, %s1028_s22, %s1029_s23  }
  0x12   :  { %1023 = dma.done.wait [#allocation3], 8192  }
  0x13   :  { %1024 = vsyncadd [#allocation3], 4294959104  ;;  %v1069_v0 = vld [vmem:[#allocation2 + $0x100] sm:$0xff]  ;;  %v1071_v1 = vld [vmem:[#allocation2 + $0x108] sm:$0xff]  ;;  %vm1031_vm0 = vmmov 0   ;;  %vm281_vm1 = vcmask 130112  }
  0x14   :  { %1582 = vst [vmem:[#allocation8_spill] sm:$0xff] %v1069_v0  ;;  %1583 = vst [vmem:[#allocation9_spill] sm:$0xff] %v1071_v1  ;;  %v1073_v2 = vld [vmem:[#allocation2] sm:$0xff]  ;;  %v141_v3 = vadd.f32 %v1071_v1, %v1069_v0  ;;  %v1077_v4 = vld [vmem:[#allocation2 + $0x8] sm:$0xff]  ;;  %vm288_vm2 = vcmask 195712   ;;  %vm295_vm3 = vcmask 261312  }
  0x15   :  { %v1079_v5 = vld [vmem:[#allocation2 + $0x110] sm:$0xff]  ;;  %v1081_v6 = vld [vmem:[#allocation2 + $0x118] sm:$0xff]  ;;  %v93_v7 = vadd.f32 %v1077_v4, %v1073_v2  ;;  %v1093_v12 = vld [vmem:[#allocation2 + $0x120] sm:$0xff]  ;;  %vm302_vm4 = vcmask 326912   ;;  %vm309_vm5 = vcmask 392512   ;;  %vm316_vm6 = vcmask 458112  }
  0x16   :  { %1584 = vst [vmem:[#allocation10_spill] sm:$0xff] %v1079_v5  ;;  %1585 = vst [vmem:[#allocation11_spill] sm:$0xff] %v1081_v6  ;;  %v1085_v8 = vld [vmem:[#allocation2 + $0x10] sm:$0xff]  ;;  %v1087_v9 = vld [vmem:[#allocation2 + $0x18] sm:$0xff]  ;;  %142 = vadd.xlane.f32.xlu1 %v141_v3  ;;  %v144_v10 = vadd.f32 %v1081_v6, %v1079_v5  ;;  %vm323_vm7 = vcmask 523712   ;;  %vm330_vm8 = vcmask 589312  }
  0x17   :  { %94 = vadd.xlane.f32.xlu0 %v93_v7  ;;  %v96_v11 = vadd.f32 %v1087_v9, %v1085_v8  ;;  %1586 = vst [vmem:[#allocation12_spill] sm:$0xff] %v1093_v12  ;;  %v1095_v13 = vld [vmem:[#allocation2 + $0x128] sm:$0xff]  ;;  %v1097_v14 = vld [vmem:[#allocation2 + $0x20] sm:$0xff]  ;;  %v1105_v18 = vld [vmem:[#allocation2 + $0x130] sm:$0xff]  ;;  %vm337_vm9 = vcmask 654912   ;;  %vm344_vm10 = vcmask 720512  }
  0x18   :  { %1587 = vst [vmem:[#allocation13_spill] sm:$0xff] %v1095_v13  ;;  %v1099_v15 = vld [vmem:[#allocation2 + $0x28] sm:$0xff]  ;;  %v147_v16 = vadd.f32 %v1095_v13, %v1093_v12  ;;  %1588 = vst [vmem:[#allocation14_spill] sm:$0xff] %v1105_v18  ;;  %v1107_v19 = vld [vmem:[#allocation2 + $0x138] sm:$0xff]  ;;  %vm351_vm11 = vcmask 786112   ;;  %vm358_vm12 = vcmask 851712  }
  0x19   :  { %v99_v17 = vadd.f32 %v1099_v15, %v1097_v14  ;;  %1589 = vst [vmem:[#allocation15_spill] sm:$0xff] %v1107_v19  ;;  %v1109_v20 = vld [vmem:[#allocation2 + $0x30] sm:$0xff]  ;;  %v1111_v21 = vld [vmem:[#allocation2 + $0x38] sm:$0xff]  ;;  %v150_v22 = vadd.f32 %v1107_v19, %v1105_v18  ;;  %v1117_v24 = vld [vmem:[#allocation2 + $0x140] sm:$0xff]  ;;  %vm365_vm13 = vcmask 917312   ;;  %vm372_vm14 = vcmask 982912  }
  0x1a   :  { %145 = vadd.xlane.f32.xlu1 %v144_v10  ;;  %v102_v23 = vadd.f32 %v1111_v21, %v1109_v20  ;;  %1590 = vst [vmem:[#allocation16_spill] sm:$0xff] %v1117_v24  ;;  %v1119_v25 = vld [vmem:[#allocation2 + $0x148] sm:$0xff]  ;;  %v1121_v26 = vld [vmem:[#allocation2 + $0x40] sm:$0xff]  ;;  %v1129_v30 = vld [vmem:[#allocation2 + $0x150] sm:$0xff]  ;;  %vm379_vm15 = vcmask 1048512  }
  0x1b   :  { %97 = vadd.xlane.f32.xlu0 %v96_v11  ;;  %1591 = vst [vmem:[#allocation17_spill] sm:$0xff] %v1119_v25  ;;  %v1123_v27 = vld [vmem:[#allocation2 + $0x48] sm:$0xff]  ;;  %v153_v28 = vadd.f32 %v1119_v25, %v1117_v24  ;;  %1592 = vst [vmem:[#allocation18_spill] sm:$0xff] %v1129_v30  ;;  %v1131_v31 = vld [vmem:[#allocation2 + $0x158] sm:$0xff] }
  0x1c   :  { %v105_v29 = vadd.f32 %v1123_v27, %v1121_v26  ;;  %1593 = vst [vmem:[#allocation19_spill] sm:$0xff] %v1131_v31  ;;  %v1133_v32 = vld [vmem:[#allocation2 + $0x50] sm:$0xff]  ;;  %v1135_v33 = vld [vmem:[#allocation2 + $0x58] sm:$0xff]  ;;  %v156_v34 = vadd.f32 %v1131_v31, %v1129_v30  ;;  %v1141_v36 = vld [vmem:[#allocation2 + $0x160] sm:$0xff] }
  0x1d   :  { %1594 = vst [vmem:[#allocation20_spill] sm:$0xff] %v1133_v32  ;;  %1595 = vst [vmem:[#allocation21_spill] sm:$0xff] %v1135_v33  ;;  %v108_v35 = vadd.f32 %v1135_v33, %v1133_v32  ;;  %v1143_v37 = vld [vmem:[#allocation2 + $0x168] sm:$0xff]  ;;  %v1145_v38 = vld [vmem:[#allocation2 + $0x60] sm:$0xff] }
  0x1e   :  { %148 = vadd.xlane.f32.xlu1 %v147_v16  ;;  %1596 = vst [vmem:[#allocation22_spill] sm:$0xff] %v1141_v36  ;;  %1597 = vst [vmem:[#allocation23_spill] sm:$0xff] %v1143_v37  ;;  %v1147_v39 = vld [vmem:[#allocation2 + $0x68] sm:$0xff]  ;;  %v159_v40 = vadd.f32 %v1143_v37, %v1141_v36  ;;  %v1153_v42 = vld [vmem:[#allocation2 + $0x170] sm:$0xff] }
  0x1f   :  { %100 = vadd.xlane.f32.xlu0 %v99_v17  ;;  %v111_v41 = vadd.f32 %v1147_v39, %v1145_v38  ;;  %1598 = vst [vmem:[#allocation24_spill] sm:$0xff] %v1153_v42  ;;  %v1155_v43 = vld [vmem:[#allocation2 + $0x178] sm:$0xff]  ;;  %v1157_v44 = vld [vmem:[#allocation2 + $0x70] sm:$0xff]  ;;  %v1165_v48 = vld [vmem:[#allocation2 + $0x180] sm:$0xff] }
  0x20   :  { %1599 = vst [vmem:[#allocation25_spill] sm:$0xff] %v1155_v43  ;;  %1600 = vst [vmem:[#allocation26_spill] sm:$0xff] %v1157_v44  ;;  %v1159_v45 = vld [vmem:[#allocation2 + $0x78] sm:$0xff]  ;;  %v162_v46 = vadd.f32 %v1155_v43, %v1153_v42  ;;  %v1167_v49 = vld [vmem:[#allocation2 + $0x188] sm:$0xff] }
  0x21   :  { %1601 = vst [vmem:[#allocation27_spill] sm:$0xff] %v1159_v45  ;;  %v114_v47 = vadd.f32 %v1159_v45, %v1157_v44  ;;  %1602 = vst [vmem:[#allocation28_spill] sm:$0xff] %v1165_v48  ;;  %v1169_v50 = vld [vmem:[#allocation2 + $0x80] sm:$0xff]  ;;  %v1171_v51 = vld [vmem:[#allocation2 + $0x88] sm:$0xff]  ;;  %v165_v52 = vadd.f32 %v1167_v49, %v1165_v48 }
  0x22   :  { %151 = vadd.xlane.f32.xlu1 %v150_v22  ;;  %1603 = vst [vmem:[#allocation29_spill] sm:$0xff] %v1167_v49  ;;  %1604 = vst [vmem:[#allocation30_spill] sm:$0xff] %v1169_v50  ;;  %v117_v53 = vadd.f32 %v1171_v51, %v1169_v50  ;;  %v1177_v54 = vld [vmem:[#allocation2 + $0x190] sm:$0xff]  ;;  %v1179_v55 = vld [vmem:[#allocation2 + $0x198] sm:$0xff] }
  0x23   :  { %103 = vadd.xlane.f32.xlu0 %v102_v23  ;;  %1605 = vst [vmem:[#allocation31_spill] sm:$0xff] %v1171_v51  ;;  %1606 = vst [vmem:[#allocation32_spill] sm:$0xff] %v1177_v54  ;;  %v1181_v56 = vld [vmem:[#allocation2 + $0x90] sm:$0xff]  ;;  %v1183_v57 = vld [vmem:[#allocation2 + $0x98] sm:$0xff]  ;;  %v168_v58 = vadd.f32 %v1179_v55, %v1177_v54 }
  0x24   :  { %1607 = vst [vmem:[#allocation33_spill] sm:$0xff] %v1179_v55  ;;  %1608 = vst [vmem:[#allocation34_spill] sm:$0xff] %v1181_v56  ;;  %v120_v59 = vadd.f32 %v1183_v57, %v1181_v56  ;;  %v1189_v60 = vld [vmem:[#allocation2 + $0x1a0] sm:$0xff]  ;;  %v1191_v61 = vld [vmem:[#allocation2 + $0x1a8] sm:$0xff] }
  0x25   :  { %1609 = vst [vmem:[#allocation35_spill] sm:$0xff] %v1183_v57  ;;  %1610 = vst [vmem:[#allocation36_spill] sm:$0xff] %v1189_v60  ;;  %v1193_v62 = vld [vmem:[#allocation2 + $0xa0] sm:$0xff]  ;;  %v1195_v63 = vld [vmem:[#allocation2 + $0xa8] sm:$0xff]  ;;  %v171_v3 = vadd.f32 %v1191_v61, %v1189_v60 }
  0x26   :  { %154 = vadd.xlane.f32.xlu1 %v153_v28  ;;  %1611 = vst [vmem:[#allocation37_spill] sm:$0xff] %v1191_v61  ;;  %1612 = vst [vmem:[#allocation38_spill] sm:$0xff] %v1193_v62  ;;  %v123_v7 = vadd.f32 %v1195_v63, %v1193_v62  ;;  %v1201_v10 = vld [vmem:[#allocation2 + $0x1b0] sm:$0xff]  ;;  %v1203_v11 = vld [vmem:[#allocation2 + $0x1b8] sm:$0xff] }
  0x27   :  { %106 = vadd.xlane.f32.xlu0 %v105_v29  ;;  %1613 = vst [vmem:[#allocation39_spill] sm:$0xff] %v1195_v63  ;;  %1614 = vst [vmem:[#allocation40_spill] sm:$0xff] %v1201_v10  ;;  %v1205_v16 = vld [vmem:[#allocation2 + $0xb0] sm:$0xff]  ;;  %v1207_v17 = vld [vmem:[#allocation2 + $0xb8] sm:$0xff]  ;;  %v174_v22 = vadd.f32 %v1203_v11, %v1201_v10  ;;  %v1030_v10 = vmov 0.0|0.0  }
  0x28   :  { %1615 = vst [vmem:[#allocation41_spill] sm:$0xff] %v1203_v11  ;;  %1616 = vst [vmem:[#allocation42_spill] sm:$0xff] %v1205_v16  ;;  %v126_v23 = vadd.f32 %v1207_v17, %v1205_v16  ;;  %v1213_v28 = vld [vmem:[#allocation2 + $0x1c0] sm:$0xff]  ;;  %v1215_v29 = vld [vmem:[#allocation2 + $0x1c8] sm:$0xff]  ;;  %948 = vmatprep.subr.bf16.mxu0 %v1030_v10 }
  0x29   :  { %1617 = vst [vmem:[#allocation43_spill] sm:$0xff] %v1207_v17  ;;  %1618 = vst [vmem:[#allocation44_spill] sm:$0xff] %v1213_v28  ;;  %v1245_v11 = vld [vmem:[#allocation2 + $0x1e8] sm:$0xff]  ;;  %v1265_v55 = vld [vmem:[#allocation2 + $0xf0] sm:$0xff] }
  0x2a   :  { %157 = vadd.xlane.f32.xlu1 %v156_v34  ;;  %1619 = vst [vmem:[#allocation45_spill] sm:$0xff] %v1215_v29  ;;  %v1217_v34 = vld [vmem:[#allocation2 + $0xc0] sm:$0xff]  ;;  %1627 = vst [vmem:[#allocation53_spill] sm:$0xff] %v1245_v11  ;;  %v1267_v54 = vld [vmem:[#allocation2 + $0xf8] sm:$0xff] }
  0x2b   :  { %109 = vadd.xlane.f32.xlu0 %v108_v35  ;;  %1620 = vst [vmem:[#allocation46_spill] sm:$0xff] %v1217_v34  ;;  %v1219_v35 = vld [vmem:[#allocation2 + $0xc8] sm:$0xff]  ;;  %1632 = vst [vmem:[#allocation58_spill] sm:$0xff] %v1265_v55 }
  0x2c   :  { %1621 = vst [vmem:[#allocation47_spill] sm:$0xff] %v1219_v35  ;;  %1633 = vst [vmem:[#allocation59_spill] sm:$0xff] %v1267_v54 }
  0x2e   :  { %160 = vadd.xlane.f32.xlu1 %v159_v40  ;;  %v177_v40 = vadd.f32 %v1215_v29, %v1213_v28  ;;  %v1247_v29 = vld [vmem:[#allocation2 + $0xe0] sm:$0xff]  ;;  %v1249_v28 = vld [vmem:[#allocation2 + $0xe8] sm:$0xff] }
  0x2f   :  { %112 = vadd.xlane.f32.xlu0 %v111_v41  ;;  %v129_v41 = vadd.f32 %v1219_v35, %v1217_v34  ;;  %1628 = vst [vmem:[#allocation54_spill] sm:$0xff] %v1247_v29  ;;  %1629 = vst [vmem:[#allocation55_spill] sm:$0xff] %v1249_v28 }
  0x32   :  { %163 = vadd.xlane.f32.xlu1 %v162_v46  ;;  %v1225_v46 = vld [vmem:[#allocation2 + $0x1d0] sm:$0xff] }
  0x33   :  { %115 = vadd.xlane.f32.xlu0 %v114_v47  ;;  %1622 = vst [vmem:[#allocation48_spill] sm:$0xff] %v1225_v46  ;;  %v1227_v47 = vld [vmem:[#allocation2 + $0x1d8] sm:$0xff] }
  0x34   :  { %1623 = vst [vmem:[#allocation49_spill] sm:$0xff] %v1227_v47 }
  0x36   :  { %166 = vadd.xlane.f32.xlu1 %v165_v52  ;;  %v1229_v52 = vld [vmem:[#allocation2 + $0xd0] sm:$0xff] }
  0x37   :  { %118 = vadd.xlane.f32.xlu0 %v117_v53  ;;  %1624 = vst [vmem:[#allocation50_spill] sm:$0xff] %v1229_v52  ;;  %v1231_v53 = vld [vmem:[#allocation2 + $0xd8] sm:$0xff] }
  0x38   :  { %1625 = vst [vmem:[#allocation51_spill] sm:$0xff] %v1231_v53 }
  0x3a   :  { %169 = vadd.xlane.f32.xlu1 %v168_v58  ;;  %v222_v58 = vld [vmem:[%s1527_s1] sm:$0xff] }
  0x3b   :  { %121 = vadd.xlane.f32.xlu0 %v120_v59  ;;  %v223_v59 = vld [vmem:[%s1527_s1 + $0x8] sm:$0xff] }
  0x3e   :  { %172 = vadd.xlane.f32.xlu1 %v171_v3  ;;  %v180_v3 = vadd.f32 %v1227_v47, %v1225_v46  ;;  %v135_v47 = vadd.f32 %v1249_v28, %v1247_v29  ;;  %v1261_v46 = vld [vmem:[#allocation2 + $0x1f0] sm:$0xff] }
  0x3f   :  { %124 = vadd.xlane.f32.xlu0 %v123_v7  ;;  %v949_v7 = vpack.c.bf16 %v223_v59, %v222_v58  ;;  %1630 = vst [vmem:[#allocation56_spill] sm:$0xff] %v1261_v46 }
  0x41   :  { %950 = vmatpush3.bf16.msra.mxu0 %v949_v7  ;;  %v1263_v7 = vld [vmem:[#allocation2 + $0x1f8] sm:$0xff] }
  0x42   :  { %175 = vadd.xlane.f32.xlu1 %v174_v22  ;;  %v132_v22 = vadd.f32 %v1231_v53, %v1229_v52  ;;  %951 = vmatprep.subr.bf16.mxu0 %v1030_v10  ;;  %1631 = vst [vmem:[#allocation57_spill] sm:$0xff] %v1263_v7 }
  0x43   :  { %127 = vadd.xlane.f32.xlu0 %v126_v23  ;;  %v1243_v23 = vld [vmem:[#allocation2 + $0x1e0] sm:$0xff] }
  0x44   :  { %1626 = vst [vmem:[#allocation52_spill] sm:$0xff] %v1243_v23  ;;  %v183_v58 = vadd.f32 %v1245_v11, %v1243_v23  ;;  %v138_v11 = vadd.f32 %v1267_v54, %v1265_v55  ;;  %v229_v23 = vld [vmem:[%s1527_s1 + $0x38] sm:$0xff] }
  0x46   :  { %178 = vadd.xlane.f32.xlu1 %v177_v40  ;;  %v224_v40 = vld [vmem:[%s1527_s1 + $0x10] sm:$0xff] }
  0x47   :  { %130 = vadd.xlane.f32.xlu0 %v129_v41  ;;  %v225_v41 = vld [vmem:[%s1527_s1 + $0x18] sm:$0xff] }
  0x48   :  { %v952_v59 = vpack.c.bf16 %v225_v41, %v224_v40  ;;  %v186_v40 = vadd.f32 %v1263_v7, %v1261_v46 }
  0x4a   :  { %181 = vadd.xlane.f32.xlu1 %v180_v3  ;;  %953 = vmatpush3.bf16.msra.mxu0 %v952_v59  ;;  %v226_v3 = vld [vmem:[%s1527_s1 + $0x20] sm:$0xff]  ;;  %v228_v59 = vld [vmem:[%s1527_s1 + $0x30] sm:$0xff] }
  0x4b   :  { %133 = vadd.xlane.f32.xlu0 %v132_v22  ;;  %954 = vmatprep.subr.bf16.mxu0 %v1030_v10  ;;  %v227_v22 = vld [vmem:[%s1527_s1 + $0x28] sm:$0xff] }
  0x4c   :  { %v955_v41 = vpack.c.bf16 %v227_v22, %v226_v3  ;;  %v231_v3 = vld [vmem:[%s1527_s1 + $0x48] sm:$0xff] }
  0x4e   :  { %184 = vadd.xlane.f32.xlu1 %v183_v58  ;;  %956 = vmatpush3.bf16.msra.mxu0 %v955_v41  ;;  %v958_v58 = vpack.c.bf16 %v229_v23, %v228_v59  ;;  %v232_v41 = vld [vmem:[%s1527_s1 + $0x50] sm:$0xff]  ;;  %v235_v59 = vld [vmem:[%s1527_s1 + $0x68] sm:$0xff] }
  0x4f   :  { %136 = vadd.xlane.f32.xlu0 %v135_v47  ;;  %957 = vmatprep.subr.bf16.mxu0 %v1030_v10  ;;  %v230_v47 = vld [vmem:[%s1527_s1 + $0x40] sm:$0xff] }
  0x50   :  { %v961_v22 = vpack.c.bf16 %v231_v3, %v230_v47  ;;  %v236_v47 = vld [vmem:[%s1527_s1 + $0x70] sm:$0xff]  ;;  %v237_v3 = vld [vmem:[%s1527_s1 + $0x78] sm:$0xff] }
  0x52   :  { %187 = vadd.xlane.f32.xlu1 %v186_v40  ;;  %959 = vmatpush3.bf16.msra.mxu0 %v958_v58  ;;  %v234_v40 = vld [vmem:[%s1527_s1 + $0x60] sm:$0xff] }
  0x53   :  { %139 = vadd.xlane.f32.xlu0 %v138_v11  ;;  %960 = vmatprep.subr.bf16.mxu0 %v1030_v10  ;;  %v233_v11 = vld [vmem:[%s1527_s1 + $0x58] sm:$0xff]  ;;  %v967_v58 = vpack.c.bf16 %v235_v59, %v234_v40 }
  0x54   :  { %v964_v23 = vpack.c.bf16 %v233_v11, %v232_v41  ;;  %v1032_v41 = vmov 0.0  }
  0x55   :  { %940 = vmatprep.mubr.msk.f32.mxu0 %vm1031_vm0, %v1032_v41  ;;  %943 = vmatprep.subr.mxu1 %v1032_v41 }
  0x56   :  { %962 = vmatpush3.bf16.msra.mxu0 %v961_v22  ;;  %v970_v22 = vpack.c.bf16 %v237_v3, %v236_v47  ;;  %945 = vmatprep.mubr.msk.f32.mxu1 %vm1031_vm0, %v1032_v41  ;;  %vm460_vm0 = vcmask 1041409  }
  0x57   :  { %963 = vmatprep.subr.bf16.mxu0 %v1030_v10 }
  0x5a   :  { %965 = vmatpush3.bf16.msra.mxu0 %v964_v23 }
  0x5b   :  { %966 = vmatprep.subr.bf16.mxu0 %v1030_v10 }
  0x5e   :  { %968 = vmatpush3.bf16.msra.mxu0 %v967_v58 }
  0x5f   :  { %969 = vmatprep.subr.bf16.mxu0 %v1030_v10 }
  0x62   :  { %971 = vmatpush3.bf16.msra.mxu0 %v970_v22  ;;  %v270_v22 = vlaneseq }
  0x64   :  { %v271_v48 = vand.u32 127, %v270_v22  ;;  %v1319_v31 = vshrl.u32 %v270_v22, 7 }
  0x66   :  { %v276_v30 = vadd.s32 4294967288, %v271_v48  ;;  %v283_v37 = vadd.s32 4294967280, %v271_v48  ;;  %v290_v19 = vadd.s32 4294967272, %v271_v48  ;;  %v297_v18 = vadd.s32 4294967264, %v271_v48 }
  0x67   :  { %v304_v24 = vadd.s32 4294967256, %v271_v48  ;;  %v311_v6 = vadd.s32 4294967248, %v271_v48  ;;  %v318_v5 = vadd.s32 4294967240, %v271_v48  ;;  %v1326_v13 = vsub.s32 %v271_v48, %v1319_v31 }
  0x68   :  { %v325_v12 = vadd.s32 4294967232, %v271_v48  ;;  %v332_v54 = vadd.s32 4294967224, %v271_v48  ;;  %v339_v55 = vadd.s32 4294967216, %v271_v48  ;;  %v279_v22 = vsub.s32 %v276_v30, %v1319_v31 }
  0x69   :  { %v1330_v1 = vsub.s32 %v283_v37, %v1319_v31  ;;  %v346_v53 = vadd.s32 4294967208, %v271_v48  ;;  %v1335_v52 = vsub.s32 %v290_v19, %v1319_v31  ;;  %v1338_v28 = vsub.s32 %v297_v18, %v1319_v31 }
  0x6a   :  { %v353_v17 = vadd.s32 4294967200, %v271_v48  ;;  %v1343_v30 = vsub.s32 %v304_v24, %v1319_v31  ;;  %v1346_v37 = vsub.s32 %v311_v6, %v1319_v31  ;;  %v1349_v16 = vsub.s32 %v318_v5, %v1319_v31 }
  0x6b   :  { %v360_v35 = vadd.s32 4294967192, %v271_v48  ;;  %v1352_v19 = vsub.s32 %v325_v12, %v1319_v31  ;;  %v1355_v18 = vsub.s32 %v332_v54, %v1319_v31  ;;  %v1358_v57 = vsub.s32 %v339_v55, %v1319_v31 }
  0x6c   :  { %v1361_v63 = vsub.s32 %v346_v53, %v1319_v31  ;;  %v367_v5 = vadd.s32 4294967184, %v271_v48  ;;  %v1364_v12 = vsub.s32 %v353_v17, %v1319_v31  ;;  %v374_v53 = vadd.s32 4294967176, %v271_v48 }
  0x6d   :  { %v1367_v55 = vsub.s32 %v360_v35, %v1319_v31 }
  0x6e   :  { %v1372_v17 = vsub.s32 %v367_v5, %v1319_v31 }
  0xa3   :  { %v143_v11 = vpop.xlane.xlu1 %142 }
  0xa4   :  { %v95_v23 = vpop.xlane.xlu0 %94  ;;  %v206_v62 = vmul.f32 0.00390625, %v143_v11 }
  0xa5   :  { %v190_v54 = vmul.f32 0.00390625, %v95_v23 }
  0xa7   :  { %v146_v40 = vpop.xlane.xlu1 %145  ;;  %v275_v48 = vrot.slane %v190_v54, %v1326_v13 }
  0xa8   :  { %v98_v59 = vpop.xlane.xlu0 %97  ;;  %v207_v34 = vmul.f32 0.00390625, %v146_v40 }
  0xa9   :  { %v191_v24 = vmul.f32 0.00390625, %v98_v59 }
  0xaa   :  { %v388_v59 = vrot.slane %v207_v34, %v279_v22 }
  0xab   :  { %v149_v10 = vpop.xlane.xlu1 %148  ;;  %v280_v32 = vrot.slane %v191_v24, %v279_v22 }
  0xac   :  { %v101_v58 = vpop.xlane.xlu0 %100  ;;  %v208_v56 = vmul.f32 0.00390625, %v149_v10 }
  0xad   :  { %v192_v40 = vmul.f32 0.00390625, %v101_v58 }
  0xae   :  { %v393_v11 = vrot.slane %v208_v56, %v1330_v1 }
  0xaf   :  { %v152_v7 = vpop.xlane.xlu1 %151 }
  0xb0   :  { %v104_v46 = vpop.xlane.xlu0 %103  ;;  %v209_v45 = vmul.f32 0.00390625, %v152_v7 }
  0xb1   :  { %v193_v51 = vmul.f32 0.00390625, %v104_v46  ;;  %v384_v46 = vrot.slane %v206_v62, %v1326_v13 }
  0xb2   :  { %v398_v35 = vrot.slane %v209_v45, %v1335_v52  ;;  %v1386_v45 = vsub.s32 %v374_v53, %v1319_v31 }
  0xb3   :  { %v155_v61 = vpop.xlane.xlu1 %154  ;;  %v294_v56 = vrot.slane %v193_v51, %v1335_v52  ;;  %v389_v23 = vsel %vm281_vm1, %v388_v59, %v384_v46 }
  0xb4   :  { %v107_v60 = vpop.xlane.xlu0 %106  ;;  %v210_v50 = vmul.f32 0.00390625, %v155_v61  ;;  %v287_v61 = vrot.slane %v192_v40, %v1330_v1  ;;  %v394_v13 = vsel %vm288_vm2, %v393_v11, %v389_v23 }
  0xb5   :  { %v194_v10 = vmul.f32 0.00390625, %v107_v60 }
  0xb7   :  { %v158_v43 = vpop.xlane.xlu1 %157  ;;  %v301_v62 = vrot.slane %v194_v10, %v1338_v28 }
  0xb8   :  { %v1309_v42 = vpop.xlane.xlu0 %109  ;;  %v211_v33 = vmul.f32 0.00390625, %v158_v43 }
  0xb9   :  { %v195_v7 = vmul.f32 0.00390625, %v1309_v42  ;;  %v403_v42 = vrot.slane %v210_v50, %v1338_v28  ;;  %v399_v28 = vsel %vm295_vm3, %v398_v35, %v394_v13 }
  0xba   :  { %v408_v1 = vrot.slane %v211_v33, %v1343_v30 }
  0xbb   :  { %v1311_v47 = vpop.xlane.xlu1 %160  ;;  %v308_v51 = vrot.slane %v195_v7, %v1343_v30  ;;  %v404_v5 = vsel %vm302_vm4, %v403_v42, %v399_v28 }
  0xbc   :  { %v1313_v3 = vpop.xlane.xlu0 %112  ;;  %v212_v34 = vmul.f32 0.00390625, %v1311_v47  ;;  %v282_v47 = vsel %vm281_vm1, %v280_v32, %v275_v48  ;;  %v409_v54 = vsel %vm309_vm5, %v408_v1, %v404_v5  ;;  %vm535_vm1 = vcmask 64512  }
  0xbd   :  { %v196_v60 = vmul.f32 0.00390625, %v1313_v3  ;;  %v289_v3 = vsel %vm288_vm2, %v287_v61, %v282_v47 }
  0xbe   :  { %v413_v33 = vrot.slane %v212_v34, %v1346_v37  ;;  %v296_v32 = vsel %vm295_vm3, %v294_v56, %v289_v3 }
  0xbf   :  { %v1315_v49 = vpop.xlane.xlu1 %163  ;;  %v315_v30 = vrot.slane %v196_v60, %v1346_v37  ;;  %v303_v40 = vsel %vm302_vm4, %v301_v62, %v296_v32 }
  0xc0   :  { %v1317_v41 = vpop.xlane.xlu0 %115  ;;  %v213_v50 = vmul.f32 0.00390625, %v1315_v49 }
  0xc1   :  { %v197_v22 = vmul.f32 0.00390625, %v1317_v41  ;;  %v310_v41 = vsel %vm309_vm5, %v308_v51, %v303_v40 }
  0xc2   :  { %v418_v53 = vrot.slane %v213_v50, %v1349_v16 }
  0xc3   :  { %v1321_v36 = vpop.xlane.xlu1 %166  ;;  %v322_v46 = vrot.slane %v197_v22, %v1349_v16 }
  0xc4   :  { %v1323_v25 = vpop.xlane.xlu0 %118  ;;  %v214_v49 = vmul.f32 0.00390625, %v1321_v36  ;;  %v414_v36 = vsel %vm316_vm6, %v413_v33, %v409_v54 }
  0xc5   :  { %v198_v59 = vmul.f32 0.00390625, %v1323_v25  ;;  %v419_v23 = vsel %vm323_vm7, %v418_v53, %v414_v36 }
  0xc6   :  { %v423_v25 = vrot.slane %v214_v49, %v1352_v19 }
  0xc7   :  { %v1332_v0 = vpop.xlane.xlu1 %169  ;;  %v329_v42 = vrot.slane %v198_v59, %v1352_v19 }
  0xc8   :  { %v1340_v29 = vpop.xlane.xlu0 %121  ;;  %v215_v10 = vmul.f32 0.00390625, %v1332_v0  ;;  %v317_v0 = vsel %vm316_vm6, %v315_v30, %v310_v41  ;;  %v424_v51 = vsel %vm330_vm8, %v423_v25, %v419_v23 }
  0xc9   :  { %v199_v11 = vmul.f32 0.00390625, %v1340_v29  ;;  %v324_v1 = vsel %vm323_vm7, %v322_v46, %v317_v0 }
  0xca   :  { %v428_v29 = vrot.slane %v215_v10, %v1355_v18 }
  0xcb   :  { %v173_v6 = vpop.xlane.xlu1 %172  ;;  %v336_v16 = vrot.slane %v199_v11, %v1355_v18  ;;  %v331_v18 = vsel %vm330_vm8, %v329_v42, %v324_v1 }
  0xcc   :  { %v125_v44 = vpop.xlane.xlu0 %124  ;;  %v216_v7 = vmul.f32 0.00390625, %v173_v6  ;;  %v429_v28 = vsel %vm337_vm9, %v428_v29, %v424_v51 }
  0xcd   :  { %v200_v61 = vmul.f32 0.00390625, %v125_v44 }
  0xce   :  { %v433_v44 = vrot.slane %v216_v7, %v1358_v57 }
  0xcf   :  { %v176_v58 = vpop.xlane.xlu1 %175  ;;  %v343_v47 = vrot.slane %v200_v61, %v1358_v57  ;;  %v338_v57 = vsel %vm337_vm9, %v336_v16, %v331_v18 }
  0xd0   :  { %v128_v43 = vpop.xlane.xlu0 %127  ;;  %v217_v35 = vmul.f32 0.00390625, %v176_v58 }
  0xd1   :  { %v201_v48 = vmul.f32 0.00390625, %v128_v43  ;;  %v345_v30 = vsel %vm344_vm10, %v343_v47, %v338_v57 }
  0xd2   :  { %v438_v43 = vrot.slane %v217_v35, %v1361_v63 }
  0xd3   :  { %v179_v52 = vpop.xlane.xlu1 %178  ;;  %v350_v50 = vrot.slane %v201_v48, %v1361_v63 }
  0xd4   :  { %v131_v24 = vpop.xlane.xlu0 %130  ;;  %v218_v56 = vmul.f32 0.00390625, %v179_v52 }
  0xd5   :  { %v202_v6 = vmul.f32 0.00390625, %v131_v24  ;;  %v434_v24 = vsel %vm344_vm10, %v433_v44, %v429_v28  ;;  %v1636_v28 = vld [vmem:[#allocation30_spill] sm:$0xff] }
  0xd6   :  { %v443_v52 = vrot.slane %v218_v56, %v1364_v12  ;;  %v439_v49 = vsel %vm351_vm11, %v438_v43, %v434_v24  ;;  %v1639_v24 = vld [vmem:[#allocation27_spill] sm:$0xff] }
  0xd7   :  { %v182_v37 = vpop.xlane.xlu1 %181  ;;  %v357_v33 = vrot.slane %v202_v6, %v1364_v12  ;;  %v352_v12 = vsel %vm351_vm11, %v350_v50, %v345_v30  ;;  %v678_v6 = vsub.s32 1, %v1319_v31  ;;  %v1641_v30 = vld [vmem:[#allocation39_spill] sm:$0xff] }
  0xd8   :  { %v134_v34 = vpop.xlane.xlu0 %133  ;;  %v219_v60 = vmul.f32 0.00390625, %v182_v37  ;;  %v444_v10 = vsel %vm358_vm12, %v443_v52, %v439_v49 }
  0xd9   :  { %v203_v58 = vmul.f32 0.00390625, %v134_v34  ;;  %v359_v53 = vsel %vm358_vm12, %v357_v33, %v352_v12  ;;  %v534_v34 = vld [vmem:[%s1528_s2] sm:$0xff]  ;;  %s1033_s2 = smov [#allocation5]  }
  0xda   :  { %v448_v22 = vrot.slane %v219_v60, %v1367_v55  ;;  %944 = vmatpush3.msra.mxu1 %v534_v34  ;;  %v1648_v34 = vld [vmem:[#allocation54_spill] sm:$0xff]  ;;  %s876_s5 = sshll.u32 %s1033_s2, 4  ;;  %s877_s5 = int_to_ptr.vmem [resolvable:$true] %s876_s5 }
  0xdb   :  { %v185_v62 = vpop.xlane.xlu1 %184  ;;  %v364_v32 = vrot.slane %v203_v58, %v1367_v55  ;;  %s1001_s6 = scalar_lea.vmem %s877_s5, 8192  ;;  %p1006_p9 = scmp.lt.s32.totalorder %s877_s5, %s877_s5 }
  0xdc   :  { %v220_v13 = vmul.f32 0.00390625, %v185_v62  ;;  %v137_v19 = vpop.xlane.xlu0 %136  ;;  %v449_v55 = vsel %vm365_vm13, %v448_v22, %v444_v10  ;;  %v1637_v22 = vld [vmem:[#allocation31_spill] sm:$0xff]  ;;  %p1002_p8 = scmp.ne.s32.totalorder %s877_s5, %s1001_s6  ;;  %p1007_p10 = scmp.lt.s32.totalorder %s1001_s6, %s1001_s6 }
  0xdd   :  { %v204_v3 = vmul.f32 0.00390625, %v137_v19  ;;  %v366_v7 = vsel %vm365_vm13, %v364_v32, %v359_v53  ;;  %v1643_v10 = vld [vmem:[#allocation35_spill] sm:$0xff]  ;;  %v1644_v53 = vld [vmem:[#allocation46_spill] sm:$0xff] }
  0xde   :  { %v453_v5 = vrot.slane %v220_v13, %v1372_v17  ;;  %p1008_p11 = por %p1007_p10, %p1006_p9 }
  0xdf   :  { %v188_v63 = vpop.xlane.xlu1 %187  ;;  %v371_v40 = vrot.slane %v204_v3, %v1372_v17  ;;  %v1635_v3 = vld [vmem:[#allocation21_spill] sm:$0xff] }
  0xe0   :  { %v221_v54 = vmul.f32 0.00390625, %v188_v63  ;;  %v140_v59 = vpop.xlane.xlu0 %139  ;;  %v454_v17 = vsel %vm372_vm14, %v453_v5, %v449_v55  ;;  %v1640_v5 = vld [vmem:[#allocation38_spill] sm:$0xff]  ;;  %p1009_p12 = pnand %p1008_p11, %p1002_p8 }
  0xe1   :  { %v205_v41 = vmul.f32 0.00390625, %v140_v59  ;;  %v373_v36 = vsel %vm372_vm14, %v371_v40, %v366_v7  ;;  %v1642_v59 = vld [vmem:[#allocation34_spill] sm:$0xff] }
  0xe2   :  { %v458_v11 = vrot.slane %v221_v54, %v1386_v45 }
  0xe3   :  { %v378_v37 = vrot.slane %v205_v41, %v1386_v45  ;;  %v611_v45 = vsub.s32 0, %v1319_v31 }
  0xe4   :  { %v459_v46 = vsel %vm379_vm15, %v458_v11, %v454_v17  ;;  %v1645_v11 = vld [vmem:[#allocation47_spill] sm:$0xff] }
  0xe5   :  { %v380_v61 = vsel %vm379_vm15, %v378_v37, %v373_v36  ;;  %v1646_v36 = vld [vmem:[#allocation42_spill] sm:$0xff] }
  0xe6   :  { %v461_v35 = vsel %vm460_vm0, %v459_v46, %v380_v61  ;;  %v1647_v61 = vld [vmem:[#allocation43_spill] sm:$0xff] }
  0xe7   :  { %941 = vmatmul.mubr.f32.vlgmr.msra.gmra.mrb[0].mxu0 %v461_v35 }
 0x1ba   :  { %v529_v0 = vpop.f32.mrb[0].mxu0 }
 0x1bb   :  { %v533_v25 = vmax.f32 %v529_v0, 0.0  ;;  %v942_v48 = vpop.f32.mrb[1].mxu0 }
 0x1bd   :  { %946 = vmatmul.mubr.msk.f32.vlgmr.msra.gmra.mrb[0].mxu1 %vm535_vm1, %v533_v25  ;;  %v1649_v25 = vld [vmem:[#allocation55_spill] sm:$0xff] }
 0x290   :  { %v605_v56 = vpop.f32.mrb[0].mxu1 }
 0x291   :  { %v612_v42 = vrot.slane %v605_v56, %v611_v45  ;;  %v947_v29 = vpop.f32.mrb[1].mxu1  ;;  %v679_v60 = vrot.slane %v605_v56, %v678_v6  ;;  %v1651_v6 = vld [vmem:[#allocation51_spill] sm:$0xff] }
 0x293   :  { %618 = vbcast.lane.b32.xlu1 %v612_v42, 264  ;;  %614 = vbcast.lane.b32.xlu0 %v612_v42, 256 }
 0x297   :  { %622 = vbcast.lane.b32.xlu1 %v612_v42, 272  ;;  %630 = vbcast.lane.b32.xlu0 %v612_v42, 288 }
 0x29b   :  { %626 = vbcast.lane.b32.xlu1 %v612_v42, 280  ;;  %638 = vbcast.lane.b32.xlu0 %v612_v42, 304 }
 0x29f   :  { %634 = vbcast.lane.b32.xlu1 %v612_v42, 296  ;;  %646 = vbcast.lane.b32.xlu0 %v612_v42, 320 }
 0x2a3   :  { %642 = vbcast.lane.b32.xlu1 %v612_v42, 312  ;;  %654 = vbcast.lane.b32.xlu0 %v612_v42, 336 }
 0x2a7   :  { %650 = vbcast.lane.b32.xlu1 %v612_v42, 328  ;;  %662 = vbcast.lane.b32.xlu0 %v612_v42, 352 }
 0x2ab   :  { %658 = vbcast.lane.b32.xlu1 %v612_v42, 344  ;;  %670 = vbcast.lane.b32.xlu0 %v612_v42, 368 }
 0x2af   :  { %666 = vbcast.lane.b32.xlu1 %v612_v42, 360  ;;  %681 = vbcast.lane.b32.xlu0 %v679_v60, 256 }
 0x2b3   :  { %674 = vbcast.lane.b32.xlu1 %v612_v42, 376  ;;  %689 = vbcast.lane.b32.xlu0 %v679_v60, 272  ;;  %v1650_v42 = vld [vmem:[#allocation50_spill] sm:$0xff] }
 0x2b7   :  { %685 = vbcast.lane.b32.xlu1 %v679_v60, 264  ;;  %697 = vbcast.lane.b32.xlu0 %v679_v60, 288 }
 0x2bb   :  { %693 = vbcast.lane.b32.xlu1 %v679_v60, 280  ;;  %705 = vbcast.lane.b32.xlu0 %v679_v60, 304 }
 0x2bf   :  { %701 = vbcast.lane.b32.xlu1 %v679_v60, 296  ;;  %713 = vbcast.lane.b32.xlu0 %v679_v60, 320 }
 0x2c3   :  { %709 = vbcast.lane.b32.xlu1 %v679_v60, 312  ;;  %721 = vbcast.lane.b32.xlu0 %v679_v60, 336 }
 0x2c7   :  { %717 = vbcast.lane.b32.xlu1 %v679_v60, 328  ;;  %729 = vbcast.lane.b32.xlu0 %v679_v60, 352 }
 0x2cb   :  { %725 = vbcast.lane.b32.xlu1 %v679_v60, 344  ;;  %737 = vbcast.lane.b32.xlu0 %v679_v60, 368 }
 0x2cf   :  { %733 = vbcast.lane.b32.xlu1 %v679_v60, 360 }
 0x2d3   :  { %741 = vbcast.lane.b32.xlu1 %v679_v60, 376 }
 0x305   :  { %v619_v31 = vpop.permute.xlu1 %618  ;;  %v615_v23 = vpop.permute.xlu0 %614 }
 0x306   :  { %v745_v16 = vmul.f32 %v619_v31, %v1085_v8  ;;  %v746_v44 = vmul.f32 %v619_v31, %v1087_v9  ;;  %v743_v58 = vmul.f32 %v615_v23, %v1073_v2  ;;  %v744_v62 = vmul.f32 %v615_v23, %v1077_v4  ;;  %v1652_v31 = vld [vmem:[#allocation8_spill] sm:$0xff] }
 0x308   :  { %809 = vst [vmem:[#allocation5 + $0x10] sm:$0xff] %v745_v16  ;;  %810 = vst [vmem:[#allocation5 + $0x18] sm:$0xff] %v746_v44  ;;  %v1653_v16 = vld [vmem:[#allocation9_spill] sm:$0xff] }
 0x309   :  { %807 = vst [vmem:[#allocation5] sm:$0xff] %v743_v58  ;;  %808 = vst [vmem:[#allocation5 + $0x8] sm:$0xff] %v744_v62  ;;  %v623_v1 = vpop.permute.xlu1 %622  ;;  %v631_v47 = vpop.permute.xlu0 %630 }
 0x30a   :  { %v747_v43 = vmul.f32 %v623_v1, %v1097_v14  ;;  %v748_v13 = vmul.f32 %v623_v1, %v1099_v15  ;;  %v751_v19 = vmul.f32 %v631_v47, %v1121_v26  ;;  %v752_v8 = vmul.f32 %v631_v47, %v1123_v27  ;;  %v1634_v27 = vld [vmem:[#allocation20_spill] sm:$0xff]  ;;  %v1654_v1 = vld [vmem:[#allocation58_spill] sm:$0xff] }
 0x30c   :  { %811 = vst [vmem:[#allocation5 + $0x20] sm:$0xff] %v747_v43  ;;  %812 = vst [vmem:[#allocation5 + $0x28] sm:$0xff] %v748_v13  ;;  %v1655_v43 = vld [vmem:[#allocation59_spill] sm:$0xff] }
 0x30d   :  { %815 = vst [vmem:[#allocation5 + $0x40] sm:$0xff] %v751_v19  ;;  %816 = vst [vmem:[#allocation5 + $0x48] sm:$0xff] %v752_v8  ;;  %v627_v2 = vpop.permute.xlu1 %626  ;;  %v639_v4 = vpop.permute.xlu0 %638  ;;  %v1656_v19 = vld [vmem:[#allocation12_spill] sm:$0xff] }
 0x30e   :  { %v749_v9 = vmul.f32 %v627_v2, %v1109_v20  ;;  %v750_v51 = vmul.f32 %v627_v2, %v1111_v21  ;;  %v755_v50 = vmul.f32 %v639_v4, %v1145_v38  ;;  %v756_v14 = vmul.f32 %v639_v4, %v1147_v39  ;;  %v1638_v39 = vld [vmem:[#allocation26_spill] sm:$0xff]  ;;  %v1657_v2 = vld [vmem:[#allocation13_spill] sm:$0xff] }
 0x310   :  { %813 = vst [vmem:[#allocation5 + $0x30] sm:$0xff] %v749_v9  ;;  %814 = vst [vmem:[#allocation5 + $0x38] sm:$0xff] %v750_v51 }
 0x311   :  { %819 = vst [vmem:[#allocation5 + $0x60] sm:$0xff] %v755_v50  ;;  %820 = vst [vmem:[#allocation5 + $0x68] sm:$0xff] %v756_v14  ;;  %v635_v15 = vpop.permute.xlu1 %634  ;;  %v647_v26 = vpop.permute.xlu0 %646  ;;  %v1658_v50 = vld [vmem:[#allocation10_spill] sm:$0xff] }
 0x312   :  { %v753_v52 = vmul.f32 %v635_v15, %v1634_v27  ;;  %v754_v18 = vmul.f32 %v635_v15, %v1635_v3  ;;  %v759_v33 = vmul.f32 %v647_v26, %v1636_v28  ;;  %v760_v20 = vmul.f32 %v647_v26, %v1637_v22  ;;  %v1659_v15 = vld [vmem:[#allocation11_spill] sm:$0xff]  ;;  %v1660_v27 = vld [vmem:[#allocation16_spill] sm:$0xff]  ;;  %v1661_v3 = vld [vmem:[#allocation17_spill] sm:$0xff] }
 0x313   :  { %v1662_v22 = vld [vmem:[#allocation14_spill] sm:$0xff] }
 0x314   :  { %817 = vst [vmem:[#allocation5 + $0x50] sm:$0xff] %v753_v52  ;;  %818 = vst [vmem:[#allocation5 + $0x58] sm:$0xff] %v754_v18 }
 0x315   :  { %823 = vst [vmem:[#allocation5 + $0x80] sm:$0xff] %v759_v33  ;;  %824 = vst [vmem:[#allocation5 + $0x88] sm:$0xff] %v760_v20  ;;  %v643_v21 = vpop.permute.xlu1 %642  ;;  %v655_v38 = vpop.permute.xlu0 %654 }
 0x316   :  { %v757_v57 = vmul.f32 %v643_v21, %v1638_v39  ;;  %v758_v32 = vmul.f32 %v643_v21, %v1639_v24  ;;  %v763_v63 = vmul.f32 %v655_v38, %v1640_v5  ;;  %v764_v49 = vmul.f32 %v655_v38, %v1641_v30  ;;  %v1663_v21 = vld [vmem:[#allocation15_spill] sm:$0xff]  ;;  %v1664_v39 = vld [vmem:[#allocation22_spill] sm:$0xff] }
 0x317   :  { %v1665_v24 = vld [vmem:[#allocation23_spill] sm:$0xff]  ;;  %v1666_v30 = vld [vmem:[#allocation18_spill] sm:$0xff] }
 0x318   :  { %821 = vst [vmem:[#allocation5 + $0x70] sm:$0xff] %v757_v57  ;;  %822 = vst [vmem:[#allocation5 + $0x78] sm:$0xff] %v758_v32 }
 0x319   :  { %827 = vst [vmem:[#allocation5 + $0xa0] sm:$0xff] %v763_v63  ;;  %828 = vst [vmem:[#allocation5 + $0xa8] sm:$0xff] %v764_v49  ;;  %v651_v40 = vpop.permute.xlu1 %650  ;;  %v663_v54 = vpop.permute.xlu0 %662 }
 0x31a   :  { %v761_v12 = vmul.f32 %v651_v40, %v1642_v59  ;;  %v762_v41 = vmul.f32 %v651_v40, %v1643_v10  ;;  %v767_v55 = vmul.f32 %v663_v54, %v1644_v53  ;;  %v768_v7 = vmul.f32 %v663_v54, %v1645_v11  ;;  %v1667_v40 = vld [vmem:[#allocation19_spill] sm:$0xff]  ;;  %v1668_v59 = vld [vmem:[#allocation28_spill] sm:$0xff]  ;;  %v1669_v10 = vld [vmem:[#allocation29_spill] sm:$0xff] }
 0x31b   :  { %v1670_v11 = vld [vmem:[#allocation24_spill] sm:$0xff] }
 0x31c   :  { %825 = vst [vmem:[#allocation5 + $0x90] sm:$0xff] %v761_v12  ;;  %826 = vst [vmem:[#allocation5 + $0x98] sm:$0xff] %v762_v41 }
 0x31d   :  { %831 = vst [vmem:[#allocation5 + $0xc0] sm:$0xff] %v767_v55  ;;  %832 = vst [vmem:[#allocation5 + $0xc8] sm:$0xff] %v768_v7  ;;  %v659_v37 = vpop.permute.xlu1 %658  ;;  %v671_v17 = vpop.permute.xlu0 %670 }
 0x31e   :  { %v765_v46 = vmul.f32 %v659_v37, %v1646_v36  ;;  %v766_v35 = vmul.f32 %v659_v37, %v1647_v61  ;;  %v771_v0 = vmul.f32 %v671_v17, %v1648_v34  ;;  %v772_v48 = vmul.f32 %v671_v17, %v1649_v25  ;;  %v1671_v37 = vld [vmem:[#allocation25_spill] sm:$0xff]  ;;  %v1672_v36 = vld [vmem:[#allocation36_spill] sm:$0xff] }
 0x31f   :  { %v1673_v61 = vld [vmem:[#allocation37_spill] sm:$0xff]  ;;  %v1674_v25 = vld [vmem:[#allocation32_spill] sm:$0xff] }
 0x320   :  { %829 = vst [vmem:[#allocation5 + $0xb0] sm:$0xff] %v765_v46  ;;  %830 = vst [vmem:[#allocation5 + $0xb8] sm:$0xff] %v766_v35 }
 0x321   :  { %835 = vst [vmem:[#allocation5 + $0xe0] sm:$0xff] %v771_v0  ;;  %836 = vst [vmem:[#allocation5 + $0xe8] sm:$0xff] %v772_v48  ;;  %v667_v45 = vpop.permute.xlu1 %666  ;;  %v682_v56 = vpop.permute.xlu0 %681 }
 0x322   :  { %v769_v29 = vmul.f32 %v667_v45, %v1650_v42  ;;  %v770_v60 = vmul.f32 %v667_v45, %v1651_v6  ;;  %v775_v23 = vmul.f32 %v682_v56, %v1652_v31  ;;  %v776_v44 = vmul.f32 %v682_v56, %v1653_v16  ;;  %v1675_v45 = vld [vmem:[#allocation33_spill] sm:$0xff]  ;;  %v1676_v42 = vld [vmem:[#allocation44_spill] sm:$0xff] }
 0x323   :  { %v1677_v6 = vld [vmem:[#allocation45_spill] sm:$0xff]  ;;  %v1678_v16 = vld [vmem:[#allocation40_spill] sm:$0xff] }
 0x324   :  { %833 = vst [vmem:[#allocation5 + $0xd0] sm:$0xff] %v769_v29  ;;  %834 = vst [vmem:[#allocation5 + $0xd8] sm:$0xff] %v770_v60 }
 0x325   :  { %839 = vst [vmem:[#allocation5 + $0x100] sm:$0xff] %v775_v23  ;;  %840 = vst [vmem:[#allocation5 + $0x108] sm:$0xff] %v776_v44  ;;  %v675_v58 = vpop.permute.xlu1 %674  ;;  %v690_v62 = vpop.permute.xlu0 %689 }
 0x326   :  { %v773_v47 = vmul.f32 %v675_v58, %v1654_v1  ;;  %v774_v13 = vmul.f32 %v675_v58, %v1655_v43  ;;  %v779_v8 = vmul.f32 %v690_v62, %v1656_v19  ;;  %v780_v4 = vmul.f32 %v690_v62, %v1657_v2  ;;  %v1679_v58 = vld [vmem:[#allocation41_spill] sm:$0xff]  ;;  %v1680_v1 = vld [vmem:[#allocation52_spill] sm:$0xff] }
 0x327   :  { %v1681_v43 = vld [vmem:[#allocation53_spill] sm:$0xff] }
 0x328   :  { %837 = vst [vmem:[#allocation5 + $0xf0] sm:$0xff] %v773_v47  ;;  %838 = vst [vmem:[#allocation5 + $0xf8] sm:$0xff] %v774_v13 }
 0x329   :  { %843 = vst [vmem:[#allocation5 + $0x120] sm:$0xff] %v779_v8  ;;  %844 = vst [vmem:[#allocation5 + $0x128] sm:$0xff] %v780_v4  ;;  %v686_v9 = vpop.permute.xlu1 %685  ;;  %v698_v51 = vpop.permute.xlu0 %697  ;;  %v1682_v8 = vld [vmem:[#allocation48_spill] sm:$0xff]  ;;  %v1683_v4 = vld [vmem:[#allocation49_spill] sm:$0xff] }
 0x32a   :  { %v777_v14 = vmul.f32 %v686_v9, %v1658_v50  ;;  %v778_v26 = vmul.f32 %v686_v9, %v1659_v15  ;;  %v783_v52 = vmul.f32 %v698_v51, %v1660_v27  ;;  %v784_v18 = vmul.f32 %v698_v51, %v1661_v3  ;;  %v1684_v50 = vld [vmem:[#allocation56_spill] sm:$0xff]  ;;  %v1685_v15 = vld [vmem:[#allocation57_spill] sm:$0xff] }
 0x32c   :  { %841 = vst [vmem:[#allocation5 + $0x110] sm:$0xff] %v777_v14  ;;  %842 = vst [vmem:[#allocation5 + $0x118] sm:$0xff] %v778_v26 }
 0x32d   :  { %847 = vst [vmem:[#allocation5 + $0x140] sm:$0xff] %v783_v52  ;;  %848 = vst [vmem:[#allocation5 + $0x148] sm:$0xff] %v784_v18  ;;  %v694_v28 = vpop.permute.xlu1 %693  ;;  %v706_v33 = vpop.permute.xlu0 %705 }
 0x32e   :  { %v781_v20 = vmul.f32 %v694_v28, %v1662_v22  ;;  %v782_v38 = vmul.f32 %v694_v28, %v1663_v21  ;;  %v787_v57 = vmul.f32 %v706_v33, %v1664_v39  ;;  %v788_v32 = vmul.f32 %v706_v33, %v1665_v24 }
 0x330   :  { %845 = vst [vmem:[#allocation5 + $0x130] sm:$0xff] %v781_v20  ;;  %846 = vst [vmem:[#allocation5 + $0x138] sm:$0xff] %v782_v38 }
 0x331   :  { %851 = vst [vmem:[#allocation5 + $0x160] sm:$0xff] %v787_v57  ;;  %852 = vst [vmem:[#allocation5 + $0x168] sm:$0xff] %v788_v32  ;;  %v702_v5 = vpop.permute.xlu1 %701  ;;  %v714_v63 = vpop.permute.xlu0 %713 }
 0x332   :  { %v785_v49 = vmul.f32 %v702_v5, %v1666_v30  ;;  %v786_v54 = vmul.f32 %v702_v5, %v1667_v40  ;;  %v791_v12 = vmul.f32 %v714_v63, %v1668_v59  ;;  %v792_v41 = vmul.f32 %v714_v63, %v1669_v10 }
 0x334   :  { %849 = vst [vmem:[#allocation5 + $0x150] sm:$0xff] %v785_v49  ;;  %850 = vst [vmem:[#allocation5 + $0x158] sm:$0xff] %v786_v54 }
 0x335   :  { %855 = vst [vmem:[#allocation5 + $0x180] sm:$0xff] %v791_v12  ;;  %856 = vst [vmem:[#allocation5 + $0x188] sm:$0xff] %v792_v41  ;;  %v710_v53 = vpop.permute.xlu1 %709  ;;  %v722_v55 = vpop.permute.xlu0 %721 }
 0x336   :  { %v789_v7 = vmul.f32 %v710_v53, %v1670_v11  ;;  %v790_v17 = vmul.f32 %v710_v53, %v1671_v37  ;;  %v795_v46 = vmul.f32 %v722_v55, %v1672_v36  ;;  %v796_v35 = vmul.f32 %v722_v55, %v1673_v61 }
 0x338   :  { %853 = vst [vmem:[#allocation5 + $0x170] sm:$0xff] %v789_v7  ;;  %854 = vst [vmem:[#allocation5 + $0x178] sm:$0xff] %v790_v17 }
 0x339   :  { %859 = vst [vmem:[#allocation5 + $0x1a0] sm:$0xff] %v795_v46  ;;  %860 = vst [vmem:[#allocation5 + $0x1a8] sm:$0xff] %v796_v35  ;;  %v718_v34 = vpop.permute.xlu1 %717  ;;  %v730_v0 = vpop.permute.xlu0 %729 }
 0x33a   :  { %v793_v48 = vmul.f32 %v718_v34, %v1674_v25  ;;  %v794_v56 = vmul.f32 %v718_v34, %v1675_v45  ;;  %v799_v29 = vmul.f32 %v730_v0, %v1676_v42  ;;  %v800_v60 = vmul.f32 %v730_v0, %v1677_v6 }
 0x33c   :  { %857 = vst [vmem:[#allocation5 + $0x190] sm:$0xff] %v793_v48  ;;  %858 = vst [vmem:[#allocation5 + $0x198] sm:$0xff] %v794_v56 }
 0x33d   :  { %863 = vst [vmem:[#allocation5 + $0x1c0] sm:$0xff] %v799_v29  ;;  %864 = vst [vmem:[#allocation5 + $0x1c8] sm:$0xff] %v800_v60  ;;  %v726_v31 = vpop.permute.xlu1 %725  ;;  %v738_v23 = vpop.permute.xlu0 %737 }
 0x33e   :  { %v797_v44 = vmul.f32 %v726_v31, %v1678_v16  ;;  %v798_v62 = vmul.f32 %v726_v31, %v1679_v58  ;;  %v803_v47 = vmul.f32 %v738_v23, %v1680_v1  ;;  %v804_v13 = vmul.f32 %v738_v23, %v1681_v43 }
 0x340   :  { %861 = vst [vmem:[#allocation5 + $0x1b0] sm:$0xff] %v797_v44  ;;  %862 = vst [vmem:[#allocation5 + $0x1b8] sm:$0xff] %v798_v62 }
 0x341   :  { %867 = vst [vmem:[#allocation5 + $0x1e0] sm:$0xff] %v803_v47  ;;  %868 = vst [vmem:[#allocation5 + $0x1e8] sm:$0xff] %v804_v13  ;;  %v734_v19 = vpop.permute.xlu1 %733 }
 0x342   :  { %v801_v2 = vmul.f32 %v734_v19, %v1682_v8  ;;  %v802_v9 = vmul.f32 %v734_v19, %v1683_v4 }
 0x344   :  { %865 = vst [vmem:[#allocation5 + $0x1d0] sm:$0xff] %v801_v2  ;;  %866 = vst [vmem:[#allocation5 + $0x1d8] sm:$0xff] %v802_v9 }
 0x345   :  { %v742_v51 = vpop.permute.xlu1 %741 }
 0x346   :  { %v805_v14 = vmul.f32 %v742_v51, %v1684_v50  ;;  %v806_v26 = vmul.f32 %v742_v51, %v1685_v15 }
 0x348   :  { %869 = vst [vmem:[#allocation5 + $0x1f0] sm:$0xff] %v805_v14  ;;  %870 = vst [vmem:[#allocation5 + $0x1f8] sm:$0xff] %v806_v26 }
 0x349   :  { %1012 = shalt.err (!%p1009_p12)
}
 0x34a   :  { %s1013_s9 = scalar_lea.hbm %s1529_s3, 8192 }
 0x34b   :  { %p1014_p13 = scmp.ne.s32.totalorder %s1529_s3, %s1013_s9  ;;  %p1017_p0 = scmp.lt.u32.totalorder %s1013_s9, %s1529_s3 }
 0x34d   :  { %p1019_p1 = pnand %p1017_p0, %p1014_p13 }
 0x34f   :  { %1022 = shalt.err (!%p1019_p1)
}
 0x350   :  { %882 = dma.vmem_to_hbm [thread:$0]  %s877_s5, 8192, %s1529_s3, [#allocation4], %s1028_s22, %s1028_s22, %s1029_s23  }
 0x351   :  { %1025 = dma.done.wait [#allocation4], 8192  }
 0x352   :  { %1026 = vsyncadd [#allocation4], 4294959104 }
 0x353   :  { %886 = vsyncpa [#allocation3], 1 }
 0x354   :  { %887 = vsyncpa [#allocation4], 1 }

</bundles_post_ra>
